<compile_context>
chip_gen: v7x
topology: tpu7x:2x2x1
jax: 0.10.0
libtpu: 0.0.40
codegen_flags: <defaults>
</compile_context>

<pallas_src>
from functools import partial

import jax
import jax.numpy as jnp
from jax.experimental import pallas as pl
from jax.experimental.pallas import tpu as pltpu


def _cdiv(a, b):
    return -(-a // b)


def _proj_kernel(x_ref, w_ref, b_ref, out_ref):
    # x_ref:   [1, K, TP]     compute_dtype patch block (streamed)
    # w_ref:   [N_pad, K]     compute_dtype (grid-invariant, VMEM-resident)
    # b_ref:   [N_pad, 1]     f32           (grid-invariant, VMEM-resident)
    # out_ref: [1, N_pad, TP] out_dtype, lane dim = TP (lane-dense stores)
    acc = jnp.dot(w_ref[...], x_ref[0], preferred_element_type=jnp.float32)  # [N_pad, TP] f32
    out_ref[0] = (acc + b_ref[...]).astype(out_ref.dtype)


def _pick_tile_and_vmem(P, K, N_pad, in_bytes, out_bytes, batch):
    """Derive the lane tile TP and the VMEM limit from an explicit per-step budget."""
    try:
        cap = int(pltpu.get_tpu_info().vmem_capacity_bytes)
    except Exception:
        cap = 64 * 1024 * 1024  # conservative (v7x-sized) fallback if the query fails
    # ~25% headroom for compiler scratch / semaphores, capped at 96 MiB on 128-MiB parts.
    budget = min((cap * 3) // 4, 96 * 1024 * 1024)

    resident = N_pad * K * in_bytes + N_pad * 4                       # weight + bias
    # Per lane of TP: double-buffered input + double-buffered output + f32 accumulator temp.
    per_lane = 2 * K * in_bytes + 2 * N_pad * out_bytes + N_pad * 4
    tp_budget = max(128, (budget - resident) // per_lane)

    if P <= tp_budget:
        TP = P                                  # full extent (also covers P < 128 / ragged P)
    else:
        TP = max(128, (min(tp_budget, P) // 128) * 128)

    # v7x has 2 TensorCores: keep >= 4 total grid steps (>= 2 per core) when P allows it.
    min_steps = 4
    if batch * _cdiv(P, TP) < min_steps and P >= 2 * 128:
        p_steps = _cdiv(min_steps, batch)
        TP = max(128, (_cdiv(P, p_steps) // 128) * 128)

    return TP, budget


@partial(jax.jit,
         static_argnames=("kernel_size", "stride", "padding", "out_dtype", "compute_dtype"))
def hfc_embed_forward(x, weight, bias, kernel_size=(16, 16), stride=(16, 16), padding=(0, 0),
                      out_dtype=None, compute_dtype=jnp.bfloat16):
    """Equivalent of HfcEmbed.forward (Conv2d with kernel_size == stride, then Identity norm).

    x:      [B, C, H, W]           (NCHW)
    weight: [embed_dim, C, kh, kw] (PyTorch Conv2d OIHW layout)
    bias:   [embed_dim]
    returns [B, embed_dim, Hp, Wp] in out_dtype (default: x.dtype, matching the module).
    """
    assert tuple(kernel_size) == tuple(stride), (
        "HfcEmbed Pallas kernel covers the patch-embed case (kernel_size == stride)")
    # TODO(synk): overlapping conv (stride != kernel_size) would need an im2col gather kernel.

    B, C, H, W = x.shape
    kh, kw = kernel_size
    ph, pw = padding
    N = weight.shape[0]
    K = C * kh * kw
    if out_dtype is None:
        out_dtype = x.dtype

    if ph or pw:
        x = jnp.pad(x, ((0, 0), (0, 0), (ph, ph), (pw, pw)))
        H, W = H + 2 * ph, W + 2 * pw

    # PyTorch Conv2d floor semantics: trailing rows/cols that don't fill a patch are dropped.
    Hp, Wp = H // kh, W // kw
    P = Hp * Wp
    x = x[:, :, : Hp * kh, : Wp * kw]

    # Patchify NCHW -> [B, K, P]; K indexed (c, i, j) j-fastest, P indexed (hp, wp) wp-fastest.
    # Under jit the pad/slice/reshape/transpose/cast fuse into ONE XLA copy pass (one HBM read
    # of x, one HBM write of `patches`); the kernel output side needs no transpose at all.
    # TODO(synk): fully fuse patchify into the kernel (x BlockSpec of (1, C, kh, Wp*kw) per patch
    # row + in-VMEM (Wp, kw) de-interleave) to remove this remaining extra activation HBM pass.
    patches = x.reshape(B, C, Hp, kh, Wp, kw)
    patches = patches.transpose(0, 1, 3, 5, 2, 4)                 # [B, C, kh, kw, Hp, Wp]
    patches = patches.reshape(B, K, P).astype(compute_dtype)      # [B, K, P]

    # Pad embed_dim up to the sublane granule (8); no-op when embed_dim % 8 == 0 (recommended).
    N_pad = ((N + 7) // 8) * 8
    w_mat = weight.reshape(N, K)
    b_mat = bias.reshape(N, 1)
    if N_pad != N:
        w_mat = jnp.pad(w_mat, ((0, N_pad - N), (0, 0)))
        b_mat = jnp.pad(b_mat, ((0, N_pad - N), (0, 0)))
    w_mat = w_mat.astype(compute_dtype)
    b_mat = b_mat.astype(jnp.float32)

    in_bytes = jnp.dtype(compute_dtype).itemsize
    out_bytes = jnp.dtype(out_dtype).itemsize
    TP, vmem_budget = _pick_tile_and_vmem(P, K, N_pad, in_bytes, out_bytes, B)
    grid = (B, _cdiv(P, TP))

    cost = pl.CostEstimate(
        flops=2 * B * P * N_pad * K,
        transcendentals=0,
        bytes_accessed=(B * K * P * in_bytes + N_pad * K * in_bytes + N_pad * 4
                        + B * N_pad * P * out_bytes),
    )

    out = pl.pallas_call(
        _proj_kernel,
        out_shape=jax.ShapeDtypeStruct((B, N_pad, P), out_dtype),
        grid=grid,
        in_specs=[
            pl.BlockSpec((1, K, TP), lambda b, p: (b, 0, p)),   # streamed patch tiles
            pl.BlockSpec((N_pad, K), lambda b, p: (0, 0)),      # resident weight
            pl.BlockSpec((N_pad, 1), lambda b, p: (0, 0)),      # resident bias
        ],
        out_specs=pl.BlockSpec((1, N_pad, TP), lambda b, p: (b, 0, p)),
        compiler_params=pltpu.CompilerParams(
            dimension_semantics=("parallel", "parallel"),  # megacore-shardable on v7x
            vmem_limit_bytes=int(vmem_budget),
        ),
        cost_estimate=cost,
        # TODO(synk): consider pipeline_mode=pl.Buffered(3) on the streamed input if profiling
        # shows DMA issue latency exposed at small TP (costs one extra TP-sized buffer).
    )(patches, w_mat, b_mat)

    if N_pad != N:
        # Extra full output pass; keep embed_dim % 8 == 0 (or slice at the consumer) to avoid it.
        out = out[:, :N, :]
    # Free reshape: kernel already emitted [B, N, P] with P = Hp*Wp in (hp, wp) order.
    return out.reshape(B, N, Hp, Wp)


def _reference_conv(x, weight, bias, stride):
    # Pure-JAX f32 reference (cross-correlation, NCHW/OIHW) for the correctness check.
    y = jax.lax.conv_general_dilated(
        x, weight, window_strides=stride, padding="VALID",
        dimension_numbers=("NCHW", "OIHW", "NCHW"),
    )
    return y + bias.reshape(1, -1, 1, 1)


if __name__ == "__main__":
    key = jax.random.PRNGKey(0)
    k1, k2, k3, k4, k5 = jax.random.split(key, 5)

    # Small shapes consistent with the module: in_chans=1, patch 4x4, image 16x16, embed_dim=32.
    B, C, H, W = 2, 1, 16, 16
    kh, kw = 4, 4
    embed_dim = 32

    x = jax.random.normal(k1, (B, C, H, W), dtype=jnp.float32)
    weight = jax.random.normal(k2, (embed_dim, C, kh, kw), dtype=jnp.float32) * 0.02
    bias = jax.random.normal(k3, (embed_dim,), dtype=jnp.float32) * 0.01

    ref = jax.block_until_ready(_reference_conv(x, weight, bias, (kh, kw)))

    # 1) Module-faithful output dtype (f32).  bf16 input streams + f32 accumulation is
    #    intentional, hence the loosened tolerance.
    out = jax.block_until_ready(
        hfc_embed_forward(x, weight, bias, kernel_size=(kh, kw), stride=(kh, kw)))
    assert out.shape == (B, embed_dim, H // kh, W // kw), out.shape
    assert out.dtype == x.dtype
    err = float(jnp.max(jnp.abs(out - ref)))
    assert jnp.allclose(out, ref, atol=1e-2, rtol=1e-2), err

    # 2) Bandwidth-optimized bf16 output (perf-review recommended mode).
    out_bf16 = jax.block_until_ready(
        hfc_embed_forward(x, weight, bias, kernel_size=(kh, kw), stride=(kh, kw),
                          out_dtype=jnp.bfloat16))
    assert out_bf16.dtype == jnp.bfloat16
    err_bf16 = float(jnp.max(jnp.abs(out_bf16.astype(jnp.float32) - ref)))
    assert jnp.allclose(out_bf16.astype(jnp.float32), ref, atol=2e-2, rtol=2e-2), err_bf16

    # 3) embed_dim not a multiple of 8 exercises the sublane-pad + slice path.
    embed_dim2 = 20
    w2 = jax.random.normal(k4, (embed_dim2, C, kh, kw), dtype=jnp.float32) * 0.02
    b2 = jax.random.normal(k5, (embed_dim2,), dtype=jnp.float32) * 0.01
    out2 = jax.block_until_ready(
        hfc_embed_forward(x, w2, b2, kernel_size=(kh, kw), stride=(kh, kw)))
    ref2 = jax.block_until_ready(_reference_conv(x, w2, b2, (kh, kw)))
    assert out2.shape == (B, embed_dim2, H // kh, W // kw), out2.shape
    err2 = float(jnp.max(jnp.abs(out2 - ref2)))
    assert jnp.allclose(out2, ref2, atol=1e-2, rtol=1e-2), err2

    print("KERNEL_OK")
</pallas_src>

<mosaic_0001>
module attributes {stable_mosaic.version = 11 : i64} {
  func.func @_proj_kernel(%arg0: i32, %arg1: i32, %arg2: memref<1x16x16xbf16, #tpu.memory_space<vmem>>, %arg3: memref<32x16xbf16, #tpu.memory_space<vmem>>, %arg4: memref<32x1xf32, #tpu.memory_space<vmem>>, %arg5: memref<1x32x16xf32, #tpu.memory_space<vmem>>) attributes {dimension_semantics = [#tpu.dimension_semantics<parallel>, #tpu.dimension_semantics<parallel>], iteration_bounds = array<i64: 2, 1>, scalar_prefetch = 0 : i64, scratch_operands = 0 : i64, tpu.core_type = #tpu.core_type<tc>, window_params = [{transform_indices = @transform_0, window_bounds = array<i64: 1, 16, 16>}, {pipeline_mode = #tpu.pipeline_mode<synchronous>, transform_indices = @transform_1, window_bounds = array<i64: 32, 16>}, {pipeline_mode = #tpu.pipeline_mode<synchronous>, transform_indices = @transform_2, window_bounds = array<i64: 32, 1>}, {transform_indices = @transform_3, window_bounds = array<i64: 1, 32, 16>}]} {
    %c0 = arith.constant 0 : index
    %c0_0 = arith.constant 0 : index
    %0 = vector.load %arg3[%c0, %c0_0] : memref<32x16xbf16, #tpu.memory_space<vmem>>, vector<32x16xbf16>
    %c0_1 = arith.constant 0 : index
    %c0_2 = arith.constant 0 : index
    %c0_3 = arith.constant 0 : index
    %1 = vector.load %arg2[%c0_1, %c0_2, %c0_3] : memref<1x16x16xbf16, #tpu.memory_space<vmem>>, vector<1x16x16xbf16>
    %2 = vector.shape_cast %1 : vector<1x16x16xbf16> to vector<16x16xbf16>
    %cst = arith.constant dense<0.000000e+00> : vector<32x16xf32>
    %3 = tpu.matmul %0, %2, %cst {dimension_numbers = #tpu.dot_dimension_numbers<[1], [0], [0], [1], [0, 0, 1, 1], [], []>} : vector<32x16xbf16>, vector<16x16xbf16>, vector<32x16xf32> -> vector<32x16xf32>
    %c0_4 = arith.constant 0 : index
    %c0_5 = arith.constant 0 : index
    %4 = vector.load %arg4[%c0_4, %c0_5] : memref<32x1xf32, #tpu.memory_space<vmem>>, vector<32x1xf32>
    %5 = vector.broadcast %4 : vector<32x1xf32> to vector<32x16xf32>
    %6 = arith.addf %3, %5 : vector<32x16xf32>
    %c0_6 = arith.constant 0 : index
    %c0_7 = arith.constant 0 : index
    %c0_8 = arith.constant 0 : index
    %7 = vector.load %arg5[%c0_6, %c0_7, %c0_8] : memref<1x32x16xf32, #tpu.memory_space<vmem>>, vector<1x32x16xf32>
    %8 = vector.shape_cast %7 : vector<1x32x16xf32> to vector<32x16xf32>
    %9 = vector.shape_cast %6 : vector<32x16xf32> to vector<1x32x16xf32>
    tpu.vector_store %arg5[%c0_6, %c0_7, %c0_8], %9 {strides = array<i32>} : memref<1x32x16xf32, #tpu.memory_space<vmem>>, vector<1x32x16xf32>,
    return
  }
  func.func @transform_0(%arg0: i32, %arg1: i32) -> (i32, i32, i32) {
    %c0_i32 = arith.constant 0 : i32
    %c0_i32_0 = arith.constant 0 : i32
    return %arg0, %c0_i32, %arg1 : i32, i32, i32
  }
  func.func @transform_1(%arg0: i32, %arg1: i32) -> (i32, i32) {
    %c0_i32 = arith.constant 0 : i32
    %c0_i32_0 = arith.constant 0 : i32
    %c0_i32_1 = arith.constant 0 : i32
    return %c0_i32, %c0_i32_0 : i32, i32
  }
  func.func @transform_2(%arg0: i32, %arg1: i32) -> (i32, i32) {
    %c0_i32 = arith.constant 0 : i32
    %c0_i32_0 = arith.constant 0 : i32
    %c0_i32_1 = arith.constant 0 : i32
    return %c0_i32, %c0_i32_0 : i32, i32
  }
  func.func @transform_3(%arg0: i32, %arg1: i32) -> (i32, i32, i32) {
    %c0_i32 = arith.constant 0 : i32
    %c0_i32_0 = arith.constant 0 : i32
    return %arg0, %c0_i32, %arg1 : i32, i32, i32
  }
}

</mosaic_0001>

<bundles_post_ra>
// kernel: hfc_embed_forward.1
= control target key start
LH: loop header
LB: loop body
LE: loop exit
PB: predicated region body
PF: predicated region fallthrough
CT: control target
= control target key end

     0   :  { %s494_s12 = smov 0   ;;  %s496_s13 = smov 0   ;;  %s551_s0 = inlined_call_operand.vmem [shape: bf16[2,16,16], index: 0, kind: input, shape index: {}]   ;;  %s552_s1 = inlined_call_operand.vmem [shape: bf16[32,16], index: 1, kind: input, shape index: {}]   ;;  %s553_s2 = inlined_call_operand.vmem [shape: f32[32,1], index: 2, kind: input, shape index: {}]   ;;  %s554_s3 = inlined_call_operand.vmem [shape: f32[2,32,16], index: 3, kind: output, shape index: {}]  }
   0x1   :  { %s498_s14 = smov 0  }
   0x2 LB: > { %s25_s15 = sadd.s32 1, %s467_s13  ;;  %p396_p0 = scmp.ge.s32.totalorder %s471_s14, 1  ;;  %s471_s14 = sphi %s498_s14, %s13_s14   ;;  %s467_s13 = sphi %s496_s13, %s556_s13   ;;  %s463_s12 = sphi %s494_s12, %s555_s12  }
   0x3   : > { %p27_p1 = scmp.ge.s32.totalorder %s25_s15, 2  ;;  %p156_p2 = scmp.lt.s32.totalorder %s471_s14, 3 }
   0x5   : > { %s558_s15 = smov (%p27_p1, %s25_s15), 0  ;;  %p157_p3 = pnand %p396_p0, %p156_p2 }
   0x6   : > { %p186_p4 = scmp.lt.s32.totalorder (!%p157_p3), %s463_s12, 1  ;;  %v447_v0 = vld [vmem:[%s552_s1] sm:$0xff] (!%p157_p3)   ;;  %vm249_vm0 = vcmask (!%p157_p3), 130048   ;;  %v211_v1 = vld [vmem:[%s553_s2 + $0x10] sm:$0xff] (!%p157_p3)  ;;  %v473_v3 = vmov (!%p157_p3), 0   ;;  %v212_v4 = vld [vmem:[%s553_s2 + $0x18] sm:$0xff] (!%p157_p3) }
   0x7   : > { %160 = sbr.rel (%p157_p3) target bundleno = 240 (0xf0), region = 32  ;;  %415 = vmatprep.mubr.msk.bf16.mxu0 (!%p157_p3), %vm249_vm0, %v447_v0  ;;  %v209_v2 = vld [vmem:[%s553_s2] sm:$0xff] (!%p157_p3)  ;;  %445 = vset.pattern.permute.xlu1 (!%p157_p3), %v473_v3  ;;  %v210_v5 = vld [vmem:[%s553_s2 + $0x8] sm:$0xff] (!%p157_p3) }
   0x8   : > { %444 = vset.pattern.permute.xlu0 (!%p157_p3), %v473_v3  ;;  %225 = vperm.xlu1 (!%p157_p3), %445, %v211_v1   ;;  %v448_v7 = vld [vmem:[%s552_s1 + $0x8] sm:$0xff] (!%p157_p3)  }
   0x9   : > { %215 = vperm.xlu0 (!%p157_p3), %444, %v209_v2  }
   0xc   : > { %230 = vperm.xlu1 (!%p157_p3), %445, %v212_v4  }
   0xd   : > { %220 = vperm.xlu0 (!%p157_p3), %444, %v210_v5  }
   0xe   : > { %s560_s12 = smov (!%p186_p4, %s463_s12), 1 }
   0xf   : > { %s408_s22 = sshll.u32 %s560_s12, 3  ;;  %s409_s5 = sshll.u32 %s560_s12, 5 }
  0x10   : > { %s193_s25 = scalar_lea.vmem %s551_s0, %s408_s22  ;;  %s201_s8 = scalar_lea.vmem %s554_s3, %s409_s5 }
  0x11   : > { %v446_v6 = vld [vmem:[%s193_s25] sm:$0xff]  }
  0x12   : > { %413 = vmatprep.subr.bf16.mxu0 %v446_v6 }
  0x13   : > { %414 = vmatpush3.bf16.msra.mxu0 %v446_v6 }
  0x16   : > { %416 = vmatmul.mubr.msk.bf16.vlgmr.msra.gmra.mrb[0].mxu0 %vm249_vm0, %v448_v7 }
  0x87   : > { %v226_v8 = vpop.permute.xlu1 %225 }
  0x88   : > { %v216_v9 = vpop.permute.xlu0 %215 }
  0x8b   : > { %v231_v13 = vpop.permute.xlu1 %230 }
  0x8c   : > { %v221_v16 = vpop.permute.xlu0 %220 }
  0xe9   : > { %v417_v10 = vpop.f32.mrb[0].mxu0 }
  0xea   : > { %v299_v11 = vadd.f32 %v417_v10, %v226_v8  ;;  %v290_v12 = vpop.f32.mrb[1].mxu0 }
  0xeb   : > { %v291_v14 = vadd.f32 %v290_v12, %v216_v9  ;;  %v418_v15 = vpop.f32.mrb[2].mxu0 }
  0xec   : > { %307 = vst.msk [vmem:[%s201_s8 + $0x10] sm:$0xff] %vm249_vm0, %v299_v11  ;;  %v302_v17 = vadd.f32 %v418_v15, %v231_v13  ;;  %v293_v18 = vpop.f32.mrb[3].mxu0 }
  0xed   : > { %305 = vst.msk [vmem:[%s201_s8] sm:$0xff] %vm249_vm0, %v291_v14  ;;  %v294_v19 = vadd.f32 %v293_v18, %v221_v16 }
  0xee   : > { %308 = vst.msk [vmem:[%s201_s8 + $0x18] sm:$0xff] %vm249_vm0, %v302_v17 }
  0xef   : > { %306 = vst.msk [vmem:[%s201_s8 + $0x8] sm:$0xff] %vm249_vm0, %v294_v19 }
  0xf0 PF: > { %s13_s14 = sadd.s32 1, %s471_s14   ;;  %s555_s12 = smov %s467_s13 }
  0xf1   : > { %p10_p5 = scmp.ge.s32.totalorder %s13_s14, 4   ;;  %s556_s13 = smov %s558_s15 }
  0xf3   :  { %12 = sbr.rel (!%p10_p5) target bundleno = 2 (0x2), region = 62 }

</bundles_post_ra>
